<compile_context>
chip_gen: v5e
topology: v5e:2x2
jax: 0.10.0
libtpu: 0.0.40
codegen_flags: <defaults>
</compile_context>

<pallas_src>
import jax
import jax.numpy as jnp
from jax.experimental import pallas as pl
from jax.experimental.pallas import tpu as pltpu


def _round_up(x, m):
    return (x + m - 1) // m * m


def _as_dtype(a, dt):
    return a if a.dtype == jnp.dtype(dt) else a.astype(dt)


def mlp_decoder_kernel(x_ref, w1_ref, b1_ref, w2_ref, b2_ref, w3_ref, b3_ref,
                       o_ref):
    cdt = w1_ref.dtype  # MXU input dtype (bf16 by default); f32 accumulation.
    # In-kernel cast of the streamed x tile (cheap VPU work, avoids a separate
    # full-HBM-pass cast op in the wrapper).
    x = x_ref[...].astype(cdt)
    # Layer 1: Linear(D_in -> 128) + ReLU
    h = jnp.dot(x, w1_ref[...], preferred_element_type=jnp.float32)
    h = jnp.maximum(h + b1_ref[...], 0.0)
    # Layer 2: Linear(128 -> 512) + ReLU
    h = jnp.dot(h.astype(cdt), w2_ref[...], preferred_element_type=jnp.float32)
    h = jnp.maximum(h + b2_ref[...], 0.0)
    # Layer 3: Linear(512 -> D_out) + ReLU
    h = jnp.dot(h.astype(cdt), w3_ref[...], preferred_element_type=jnp.float32)
    h = jnp.maximum(h + b3_ref[...], 0.0)
    o_ref[...] = h.astype(o_ref.dtype)


def mlp_decoder(x, params, *, tile_b=1024, compute_dtype=jnp.bfloat16,
                out_dtype=None):
    """x: (B, D_in); params: dict w1,b1,w2,b2,w3,b3 with W stored as (in, out)."""
    B, D_in = x.shape
    out_dtype = x.dtype if out_dtype is None else jnp.dtype(out_dtype)

    w1 = _as_dtype(params["w1"], compute_dtype)
    w2 = _as_dtype(params["w2"], compute_dtype)
    w3 = _as_dtype(params["w3"], compute_dtype)
    b1 = _as_dtype(params["b1"], jnp.float32)
    b2 = _as_dtype(params["b2"], jnp.float32)
    b3 = _as_dtype(params["b3"], jnp.float32)
    D_h1, D_h2, D_out = w1.shape[1], w2.shape[1], w3.shape[1]

    # Batch tile: large (amortizes per-grid-step overhead), multiple of 8,
    # never larger than the 8-aligned batch. Once the batch is big enough to
    # keep each half >= 512 rows, cap the tile so the grid has >= 2 steps --
    # on v7x the single "parallel" axis is what feeds both TensorCores.
    tile_b = max(8, min(int(tile_b), _round_up(B, 8)))
    if B >= 2 * 512:
        tile_b = min(tile_b, _round_up(pl.cdiv(B, 2), 8))
    tile_b = _round_up(tile_b, 8)

    # Ragged final block instead of pad+slice: rows are independent (no
    # cross-row reduction), OOB writes of the last block are masked, so this
    # is safe and saves two full HBM passes over x / out.
    grid = (pl.cdiv(B, tile_b),)

    flops = 2 * B * (D_in * D_h1 + D_h1 * D_h2 + D_h2 * D_out)
    bytes_accessed = (
        B * D_in * x.dtype.itemsize
        + sum(int(a.size) * a.dtype.itemsize for a in (w1, b1, w2, b2, w3, b3))
        + B * D_out * out_dtype.itemsize)
    cost = pl.CostEstimate(flops=flops, transcendentals=0,
                           bytes_accessed=bytes_accessed)

    # VMEM budget derived from the tile (x/out double-buffered, weights, f32 +
    # compute-dtype intermediates) with 2x headroom, capped at v7x's 64 MiB.
    cds = jnp.dtype(compute_dtype).itemsize
    footprint = (
        2 * tile_b * D_in * x.dtype.itemsize
        + 2 * tile_b * D_out * out_dtype.itemsize
        + 2 * cds * (D_in * D_h1 + D_h1 * D_h2 + D_h2 * D_out)
        + 2 * 4 * (D_h1 + D_h2 + D_out)
        + tile_b * (4 + cds) * (D_h1 + D_h2)
        + tile_b * 4 * D_out)
    vmem_limit = int(min(64 * 1024 * 1024,
                         max(32 * 1024 * 1024, 2 * footprint)))

    def resident(arr):
        nd = arr.ndim
        return pl.BlockSpec(arr.shape, lambda i: (0,) * nd)

    return pl.pallas_call(
        mlp_decoder_kernel,
        out_shape=jax.ShapeDtypeStruct((B, D_out), out_dtype),
        grid_spec=pltpu.PrefetchScalarGridSpec(
            num_scalar_prefetch=0,
            grid=grid,
            in_specs=[
                pl.BlockSpec((tile_b, D_in), lambda i: (i, 0)),  # streamed x
                resident(w1), resident(b1),
                resident(w2), resident(b2),
                resident(w3), resident(b3),
            ],
            out_specs=pl.BlockSpec((tile_b, D_out), lambda i: (i, 0)),
        ),
        compiler_params=pltpu.CompilerParams(
            dimension_semantics=("parallel",),
            vmem_limit_bytes=vmem_limit,
        ),
        cost_estimate=cost,
    )(x, w1, b1, w2, b2, w3, b3)


def init_params(key, d_in, d_out, compute_dtype=jnp.bfloat16):
    """nn.Linear-style init; weights transposed to (in, out) and pre-cast once
    to the kernel's compute dtypes (weights -> compute_dtype, biases -> f32)."""
    ks = jax.random.split(key, 6)

    def layer(kw, kb, fan_in, fan_out):
        bound = 1.0 / jnp.sqrt(fan_in)
        w = jax.random.uniform(kw, (fan_in, fan_out), jnp.float32, -bound, bound)
        b = jax.random.uniform(kb, (1, fan_out), jnp.float32, -bound, bound)
        return w.astype(compute_dtype), b.astype(jnp.float32)

    w1, b1 = layer(ks[0], ks[1], d_in, 128)
    w2, b2 = layer(ks[2], ks[3], 128, 512)
    w3, b3 = layer(ks[4], ks[5], 512, d_out)
    return {"w1": w1, "b1": b1, "w2": w2, "b2": b2, "w3": w3, "b3": b3}


def mlp_decoder_ref(x, p, compute_dtype=jnp.bfloat16):
    """Pure-JAX reference using the same bf16-input / f32-accumulate math."""
    def layer(h, w, b):
        y = jnp.dot(h.astype(compute_dtype), w.astype(compute_dtype),
                    preferred_element_type=jnp.float32) + b.astype(jnp.float32)
        return jnp.maximum(y, 0.0)

    h = layer(x, p["w1"], p["b1"])
    h = layer(h, p["w2"], p["b2"])
    return layer(h, p["w3"], p["b3"])


if __name__ == "__main__":
    # Shapes implied by the module: hidden_dim=(4,4,8) -> D_in=128,
    # input_dim=256. The PyTorch forward takes x already flattened to (B, D_in).
    hidden_dim = (4, 4, 8)
    input_dim = 256
    d_in = hidden_dim[0] * hidden_dim[1] * hidden_dim[2]  # 128

    key = jax.random.PRNGKey(0)
    kx1, kx2, kp = jax.random.split(key, 3)
    params = init_params(kp, d_in, input_dim)

    # Small sanity check (single grid step).
    x_small = jax.random.normal(kx1, (8, d_in), jnp.float32)
    out_small = jax.block_until_ready(mlp_decoder(x_small, params))
    ref_small = mlp_decoder_ref(x_small, params)
    assert out_small.shape == (8, input_dim)
    assert jnp.allclose(out_small, ref_small, atol=2e-2, rtol=2e-2)

    # Larger batch: exercises the >=2-step grid cap (v7x work balance) and a
    # ragged final block (no pad/slice in the wrapper).
    x_big = jax.random.normal(kx2, (1111, d_in), jnp.float32)
    out_big = jax.block_until_ready(mlp_decoder(x_big, params))
    ref_big = mlp_decoder_ref(x_big, params)
    assert out_big.shape == (1111, input_dim)
    assert jnp.allclose(out_big, ref_big, atol=2e-2, rtol=2e-2)

    print("KERNEL_OK")
</pallas_src>

<mosaic_0001>
module attributes {stable_mosaic.version = 11 : i64} {
  func.func @mlp_decoder_kernel(%arg0: i32, %arg1: memref<8x128xf32, #tpu.memory_space<vmem>>, %arg2: memref<128x128xbf16, #tpu.memory_space<vmem>>, %arg3: memref<1x128xf32, #tpu.memory_space<vmem>>, %arg4: memref<128x512xbf16, #tpu.memory_space<vmem>>, %arg5: memref<1x512xf32, #tpu.memory_space<vmem>>, %arg6: memref<512x256xbf16, #tpu.memory_space<vmem>>, %arg7: memref<1x256xf32, #tpu.memory_space<vmem>>, %arg8: memref<8x256xf32, #tpu.memory_space<vmem>>) attributes {dimension_semantics = [#tpu.dimension_semantics<parallel>], iteration_bounds = array<i64: 1>, scalar_prefetch = 0 : i64, scratch_operands = 0 : i64, tpu.core_type = #tpu.core_type<tc>, window_params = [{transform_indices = @transform_0, window_bounds = array<i64: 8, 128>}, {pipeline_mode = #tpu.pipeline_mode<synchronous>, transform_indices = @transform_1, window_bounds = array<i64: 128, 128>}, {pipeline_mode = #tpu.pipeline_mode<synchronous>, transform_indices = @transform_2, window_bounds = array<i64: 1, 128>}, {pipeline_mode = #tpu.pipeline_mode<synchronous>, transform_indices = @transform_3, window_bounds = array<i64: 128, 512>}, {pipeline_mode = #tpu.pipeline_mode<synchronous>, transform_indices = @transform_4, window_bounds = array<i64: 1, 512>}, {pipeline_mode = #tpu.pipeline_mode<synchronous>, transform_indices = @transform_5, window_bounds = array<i64: 512, 256>}, {pipeline_mode = #tpu.pipeline_mode<synchronous>, transform_indices = @transform_6, window_bounds = array<i64: 1, 256>}, {transform_indices = @transform_7, window_bounds = array<i64: 8, 256>}]} {
    %c0 = arith.constant 0 : index
    %c0_0 = arith.constant 0 : index
    %0 = vector.load %arg1[%c0, %c0_0] : memref<8x128xf32, #tpu.memory_space<vmem>>, vector<8x128xf32>
    %1 = arith.truncf %0 : vector<8x128xf32> to vector<8x128xbf16>
    %c0_1 = arith.constant 0 : index
    %c0_2 = arith.constant 0 : index
    %2 = vector.load %arg2[%c0_1, %c0_2] : memref<128x128xbf16, #tpu.memory_space<vmem>>, vector<128x128xbf16>
    %cst = arith.constant dense<0.000000e+00> : vector<8x128xf32>
    %3 = tpu.matmul %1, %2, %cst {dimension_numbers = #tpu.dot_dimension_numbers<[1], [0], [0], [1], [0, 0, 1, 1], [], []>} : vector<8x128xbf16>, vector<128x128xbf16>, vector<8x128xf32> -> vector<8x128xf32>
    %c0_3 = arith.constant 0 : index
    %c0_4 = arith.constant 0 : index
    %4 = vector.load %arg3[%c0_3, %c0_4] : memref<1x128xf32, #tpu.memory_space<vmem>>, vector<1x128xf32>
    %5 = vector.broadcast %4 : vector<1x128xf32> to vector<8x128xf32>
    %6 = arith.addf %3, %5 : vector<8x128xf32>
    %cst_5 = arith.constant 0.000000e+00 : f32
    %7 = vector.broadcast %cst_5 : f32 to vector<8x128xf32>
    %8 = arith.maximumf %6, %7 : vector<8x128xf32>
    %9 = arith.truncf %8 : vector<8x128xf32> to vector<8x128xbf16>
    %c0_6 = arith.constant 0 : index
    %c0_7 = arith.constant 0 : index
    %10 = vector.load %arg4[%c0_6, %c0_7] : memref<128x512xbf16, #tpu.memory_space<vmem>>, vector<128x512xbf16>
    %cst_8 = arith.constant dense<0.000000e+00> : vector<8x512xf32>
    %11 = tpu.matmul %9, %10, %cst_8 {dimension_numbers = #tpu.dot_dimension_numbers<[1], [0], [0], [1], [0, 0, 1, 1], [], []>} : vector<8x128xbf16>, vector<128x512xbf16>, vector<8x512xf32> -> vector<8x512xf32>
    %c0_9 = arith.constant 0 : index
    %c0_10 = arith.constant 0 : index
    %12 = vector.load %arg5[%c0_9, %c0_10] : memref<1x512xf32, #tpu.memory_space<vmem>>, vector<1x512xf32>
    %13 = vector.broadcast %12 : vector<1x512xf32> to vector<8x512xf32>
    %14 = arith.addf %11, %13 : vector<8x512xf32>
    %cst_11 = arith.constant 0.000000e+00 : f32
    %15 = vector.broadcast %cst_11 : f32 to vector<8x512xf32>
    %16 = arith.maximumf %14, %15 : vector<8x512xf32>
    %17 = arith.truncf %16 : vector<8x512xf32> to vector<8x512xbf16>
    %c0_12 = arith.constant 0 : index
    %c0_13 = arith.constant 0 : index
    %18 = vector.load %arg6[%c0_12, %c0_13] : memref<512x256xbf16, #tpu.memory_space<vmem>>, vector<512x256xbf16>
    %cst_14 = arith.constant dense<0.000000e+00> : vector<8x256xf32>
    %19 = tpu.matmul %17, %18, %cst_14 {dimension_numbers = #tpu.dot_dimension_numbers<[1], [0], [0], [1], [0, 0, 1, 1], [], []>} : vector<8x512xbf16>, vector<512x256xbf16>, vector<8x256xf32> -> vector<8x256xf32>
    %c0_15 = arith.constant 0 : index
    %c0_16 = arith.constant 0 : index
    %20 = vector.load %arg7[%c0_15, %c0_16] : memref<1x256xf32, #tpu.memory_space<vmem>>, vector<1x256xf32>
    %21 = vector.broadcast %20 : vector<1x256xf32> to vector<8x256xf32>
    %22 = arith.addf %19, %21 : vector<8x256xf32>
    %cst_17 = arith.constant 0.000000e+00 : f32
    %23 = vector.broadcast %cst_17 : f32 to vector<8x256xf32>
    %24 = arith.maximumf %22, %23 : vector<8x256xf32>
    %c0_18 = arith.constant 0 : index
    %c0_19 = arith.constant 0 : index
    %25 = vector.load %arg8[%c0_18, %c0_19] : memref<8x256xf32, #tpu.memory_space<vmem>>, vector<8x256xf32>
    tpu.vector_store %arg8[%c0_18, %c0_19], %24 {strides = array<i32>} : memref<8x256xf32, #tpu.memory_space<vmem>>, vector<8x256xf32>,
    return
  }
  func.func @transform_0(%arg0: i32) -> (i32, i32) {
    %c0_i32 = arith.constant 0 : i32
    %c0_i32_0 = arith.constant 0 : i32
    return %arg0, %c0_i32 : i32, i32
  }
  func.func @transform_1(%arg0: i32) -> (i32, i32) {
    %c0_i32 = arith.constant 0 : i32
    %c0_i32_0 = arith.constant 0 : i32
    %c0_i32_1 = arith.constant 0 : i32
    return %c0_i32, %c0_i32_0 : i32, i32
  }
  func.func @transform_2(%arg0: i32) -> (i32, i32) {
    %c0_i32 = arith.constant 0 : i32
    %c0_i32_0 = arith.constant 0 : i32
    %c0_i32_1 = arith.constant 0 : i32
    return %c0_i32, %c0_i32_0 : i32, i32
  }
  func.func @transform_3(%arg0: i32) -> (i32, i32) {
    %c0_i32 = arith.constant 0 : i32
    %c0_i32_0 = arith.constant 0 : i32
    %c0_i32_1 = arith.constant 0 : i32
    return %c0_i32, %c0_i32_0 : i32, i32
  }
  func.func @transform_4(%arg0: i32) -> (i32, i32) {
    %c0_i32 = arith.constant 0 : i32
    %c0_i32_0 = arith.constant 0 : i32
    %c0_i32_1 = arith.constant 0 : i32
    return %c0_i32, %c0_i32_0 : i32, i32
  }
  func.func @transform_5(%arg0: i32) -> (i32, i32) {
    %c0_i32 = arith.constant 0 : i32
    %c0_i32_0 = arith.constant 0 : i32
    %c0_i32_1 = arith.constant 0 : i32
    return %c0_i32, %c0_i32_0 : i32, i32
  }
  func.func @transform_6(%arg0: i32) -> (i32, i32) {
    %c0_i32 = arith.constant 0 : i32
    %c0_i32_0 = arith.constant 0 : i32
    %c0_i32_1 = arith.constant 0 : i32
    return %c0_i32, %c0_i32_0 : i32, i32
  }
  func.func @transform_7(%arg0: i32) -> (i32, i32) {
    %c0_i32 = arith.constant 0 : i32
    %c0_i32_0 = arith.constant 0 : i32
    return %arg0, %c0_i32 : i32, i32
  }
}

</mosaic_0001>

<bundles_post_ra>
// kernel: tpu_custom_call.1
= control target key start
LH: loop header
LB: loop body
LE: loop exit
PB: predicated region body
PF: predicated region fallthrough
CT: control target
= control target key end

     0   :  { %12 = vsyncpa [#allocation3], 0  ;;  %s1726_s0 = inlined_call_operand.hbm [shape: f32[8,128], index: 0, kind: input, shape index: {}]   ;;  %s1727_s1 = inlined_call_operand.hbm [shape: bf16[128,128], index: 1, kind: input, shape index: {}]   ;;  %s1728_s2 = inlined_call_operand.vmem [shape: f32[1,128], index: 2, kind: input, shape index: {}]   ;;  %s1729_s3 = inlined_call_operand.hbm [shape: bf16[128,512], index: 3, kind: input, shape index: {}]   ;;  %s1730_s4 = inlined_call_operand.hbm [shape: f32[1,512], index: 4, kind: input, shape index: {}]   ;;  %s1731_s5 = inlined_call_operand.hbm [shape: bf16[512,256], index: 5, kind: input, shape index: {}]   ;;  %s1732_s6 = inlined_call_operand.vmem [shape: f32[1,256], index: 6, kind: input, shape index: {}]   ;;  %s1733_s7 = inlined_call_operand.hbm [shape: f32[8,256], index: 7, kind: output, shape index: {}]  }
   0x1   :  { %13 = vsyncpa [#allocation6], 0 }
   0x2   :  { %14 = vsyncpa [#allocation9], 0  ;;  %s31_s26 = sshll.u32 %s1727_s1, 4  ;;  %s32_s26 = int_to_ptr.hbm [resolvable:$true] %s31_s26 }
   0x3   :  { %15 = vsyncpa [#allocation4], 0  ;;  %s1650_s27 = smov [#allocation5]   ;;  %s60_s8 = sshll.u32 %s1730_s4, 4  ;;  %s61_s8 = int_to_ptr.hbm [resolvable:$true] %s60_s8 }
   0x4   :  { %s33_s28 = sshll.u32 %s1650_s27, 4  ;;  %s1651_s9 = smov 64   ;;  %s34_s28 = int_to_ptr.vmem [resolvable:$true] %s33_s28 }
   0x5   :  { %s1652_s10 = smov 4   ;;  %s1653_s11 = smov [#allocation8]  }
   0x6   :  { %39 = dma.hbm_to_vmem [thread:$0]  %s32_s26, 1024, %s34_s28, [#allocation6], %s1651_s9, %s1651_s9, %s1652_s10  }
   0x7   :  { %s62_s12 = sshll.u32 %s1653_s11, 4  ;;  %s21_s15 = sshll.u32 %s1726_s0, 4  ;;  %s63_s12 = int_to_ptr.vmem [resolvable:$true] %s62_s12  ;;  %s22_s15 = int_to_ptr.hbm [resolvable:$true] %s21_s15 }
   0x8   :  { %65 = dma.hbm_to_vmem [thread:$0]  %s61_s8, 64, %s63_s12, [#allocation9]  }
   0x9   :  { %s46_s17 = sshll.u32 %s1729_s3, 4  ;;  %s1654_s18 = smov [#allocation2]   ;;  %s47_s17 = int_to_ptr.hbm [resolvable:$true] %s46_s17 }
   0xa   :  { %s23_s19 = sshll.u32 %s1654_s18, 4  ;;  %s1655_s4 = smov [#allocation7]   ;;  %s24_s19 = int_to_ptr.vmem [resolvable:$true] %s23_s19 }
   0xb   :  { %26 = dma.hbm_to_vmem [thread:$0]  %s22_s15, 128, %s24_s19, [#allocation3]  }
   0xc   :  { %s48_s20 = sshll.u32 %s1655_s4, 4  ;;  %s1656_s21 = smov 256   ;;  %s49_s20 = int_to_ptr.vmem [resolvable:$true] %s48_s20 }
   0xd   :  { %s1657_s22 = smov 16   ;;  %s70_s24 = sshll.u32 %s1731_s5, 4  ;;  %s71_s24 = int_to_ptr.hbm [resolvable:$true] %s70_s24 }
   0xe   :  { %54 = dma.hbm_to_vmem [thread:$0]  %s47_s17, 4096, %s49_s20, [#allocation6], %s1656_s21, %s1656_s21, %s1657_s22  }
   0xf   :  { %s1658_s25 = smov [#allocation10]   ;;  %s1659_s3 = smov 128  }
  0x10   :  { %s72_s26 = sshll.u32 %s1658_s25, 4  ;;  %s1660_s27 = smov 8   ;;  %s73_s26 = int_to_ptr.vmem [resolvable:$true] %s72_s26 }
  0x11   :  { %78 = dma.hbm_to_vmem [thread:$0]  %s71_s24, 8192, %s73_s26, [#allocation9], %s1659_s3, %s1659_s3, %s1660_s27  }
  0x12   :  { %1642 = dma.done.wait [#allocation3], 128  }
  0x13   :  { %1643 = vsyncadd [#allocation3], 4294967168 }
  0x14   :  { %1644 = dma.done.wait [#allocation6], 5120  }
  0x15   :  { %1645 = vsyncadd [#allocation6], 4294962176 }
  0x16   :  { %1646 = dma.done.wait [#allocation9], 8256  }
  0x17   :  { %1647 = vsyncadd [#allocation9], 4294959040  ;;  %v1388_v0 = vld [vmem:[#allocation5 + $0x38] sm:$0xff]  ;;  %v1387_v1 = vld [vmem:[#allocation5 + $0x30] sm:$0xff]  ;;  %s953_s10 = sshll.u32 %s1733_s7, 4  ;;  %s954_s10 = int_to_ptr.hbm [resolvable:$true] %s953_s10 }
  0x18   :  { %171 = vmatpush.bf16.msra.mxu0 %v1388_v0  ;;  %v1111_v2 = vld [vmem:[#allocation7 + $0xe0] sm:$0xf]  ;;  %v1419_v3 = vld [vmem:[#allocation7 + $0xec] sm:$0xf0]  ;;  %v1417_v4 = vld [vmem:[#allocation7 + $0xe4] sm:$0xf] }
  0x19   :  { %v1112_v5 = vor.u32 %v1419_v3, %v1111_v2  ;;  %v1113_v6 = vld [vmem:[#allocation7 + $0xf0] sm:$0xf0]  ;;  %v1119_v7 = vld [vmem:[#allocation7 + $0xe8] sm:$0xf]  ;;  %v1420_v8 = vld [vmem:[#allocation7 + $0xf4] sm:$0xf0] }
  0x1a   :  { %v1386_v9 = vld [vmem:[#allocation5 + $0x28] sm:$0xff]  ;;  %v1116_v10 = vor.u32 %v1417_v4, %v1113_v6  ;;  %v1120_v11 = vor.u32 %v1420_v8, %v1119_v7  ;;  %v1095_v12 = vld [vmem:[#allocation7 + $0xc0] sm:$0xf]  ;;  %v1415_v13 = vld [vmem:[#allocation7 + $0xcc] sm:$0xf0] }
  0x1b   :  { %388 = vmatpush.bf16.msra.mxu1 %v1112_v5  ;;  %v1413_v14 = vld [vmem:[#allocation7 + $0xc4] sm:$0xf]  ;;  %v1097_v15 = vld [vmem:[#allocation7 + $0xd0] sm:$0xf0]  ;;  %v1096_v16 = vor.u32 %v1415_v13, %v1095_v12  ;;  %v1103_v18 = vld [vmem:[#allocation7 + $0xc8] sm:$0xf] }
  0x1c   :  { %172 = vmatpush.bf16.msra.mxu0 %v1387_v1  ;;  %401 = vmatpush.bf16.msra.mxu2 %v1116_v10  ;;  %v1100_v17 = vor.u32 %v1413_v14, %v1097_v15  ;;  %v1416_v19 = vld [vmem:[#allocation7 + $0xd4] sm:$0xf0]  ;;  %v1079_v21 = vld [vmem:[#allocation7 + $0xa0] sm:$0xf]  ;;  %v1411_v22 = vld [vmem:[#allocation7 + $0xac] sm:$0xf0] }
  0x1d   :  { %414 = vmatpush.bf16.msra.mxu3 %v1120_v11  ;;  %v1104_v20 = vor.u32 %v1416_v19, %v1103_v18  ;;  %v1409_v23 = vld [vmem:[#allocation7 + $0xa4] sm:$0xf]  ;;  %v1081_v24 = vld [vmem:[#allocation7 + $0xb0] sm:$0xf0]  ;;  %v1087_v25 = vld [vmem:[#allocation7 + $0xa8] sm:$0xf]  ;;  %v1080_v27 = vor.u32 %v1411_v22, %v1079_v21 }
  0x1e   :  { %v1385_v26 = vld [vmem:[#allocation5 + $0x20] sm:$0xff]  ;;  %v1412_v28 = vld [vmem:[#allocation7 + $0xb4] sm:$0xf0]  ;;  %v1084_v29 = vor.u32 %v1409_v23, %v1081_v24  ;;  %v1407_v32 = vld [vmem:[#allocation7 + $0x8c] sm:$0xf0] }
  0x1f   :  { %389 = vmatpush.bf16.msra.mxu1 %v1096_v16  ;;  %v1088_v30 = vor.u32 %v1412_v28, %v1087_v25  ;;  %v1063_v31 = vld [vmem:[#allocation7 + $0x80] sm:$0xf]  ;;  %v1405_v33 = vld [vmem:[#allocation7 + $0x84] sm:$0xf]  ;;  %v1065_v34 = vld [vmem:[#allocation7 + $0x90] sm:$0xf0] }
  0x20   :  { %173 = vmatpush.bf16.msra.mxu0 %v1386_v9  ;;  %402 = vmatpush.bf16.msra.mxu2 %v1100_v17  ;;  %v1071_v35 = vld [vmem:[#allocation7 + $0x88] sm:$0xf]  ;;  %v1408_v36 = vld [vmem:[#allocation7 + $0x94] sm:$0xf0]  ;;  %v1064_v38 = vor.u32 %v1407_v32, %v1063_v31  ;;  %v1068_v39 = vor.u32 %v1405_v33, %v1065_v34  ;;  %v1047_v41 = vld [vmem:[#allocation7 + $0x60] sm:$0xf] }
  0x21   :  { %415 = vmatpush.bf16.msra.mxu3 %v1104_v20  ;;  %v1384_v37 = vld [vmem:[#allocation5 + $0x18] sm:$0xff]  ;;  %v1072_v40 = vor.u32 %v1408_v36, %v1071_v35  ;;  %v1403_v42 = vld [vmem:[#allocation7 + $0x6c] sm:$0xf0]  ;;  %v1401_v43 = vld [vmem:[#allocation7 + $0x64] sm:$0xf] }
  0x22   :  { %v1049_v44 = vld [vmem:[#allocation7 + $0x70] sm:$0xf0]  ;;  %v1055_v45 = vld [vmem:[#allocation7 + $0x68] sm:$0xf]  ;;  %v1404_v46 = vld [vmem:[#allocation7 + $0x74] sm:$0xf0]  ;;  %v1048_v48 = vor.u32 %v1403_v42, %v1047_v41 }
  0x23   :  { %390 = vmatpush.bf16.msra.mxu1 %v1080_v27  ;;  %v1383_v47 = vld [vmem:[#allocation5 + $0x10] sm:$0xff]  ;;  %v1031_v49 = vld [vmem:[#allocation7 + $0x40] sm:$0xf]  ;;  %v1052_v50 = vor.u32 %v1401_v43, %v1049_v44  ;;  %v1056_v51 = vor.u32 %v1404_v46, %v1055_v45  ;;  %v1397_v53 = vld [vmem:[#allocation7 + $0x44] sm:$0xf] }
  0x24   :  { %174 = vmatpush.bf16.msra.mxu0 %v1385_v26  ;;  %403 = vmatpush.bf16.msra.mxu2 %v1084_v29  ;;  %v1399_v52 = vld [vmem:[#allocation7 + $0x4c] sm:$0xf0]  ;;  %v1033_v54 = vld [vmem:[#allocation7 + $0x50] sm:$0xf0]  ;;  %v1039_v55 = vld [vmem:[#allocation7 + $0x48] sm:$0xf] }
  0x25   :  { %416 = vmatpush.bf16.msra.mxu3 %v1088_v30  ;;  %v1400_v56 = vld [vmem:[#allocation7 + $0x54] sm:$0xf0]  ;;  %v1382_v57 = vld [vmem:[#allocation5 + $0x8] sm:$0xff]  ;;  %v1032_v58 = vor.u32 %v1399_v52, %v1031_v49  ;;  %v1036_v59 = vor.u32 %v1397_v53, %v1033_v54  ;;  %v1121_v62 = vld [vmem:[#allocation7 + $0xf8] sm:$0xf0] }
  0x26   :  { %v1040_v60 = vor.u32 %v1400_v56, %v1039_v55  ;;  %v1418_v61 = vld [vmem:[#allocation7 + $0xec] sm:$0xf]  ;;  %v1381_v63 = vld [vmem:[#allocation5] sm:$0xff]  ;;  %v101_v0 = vld [vmem:[#allocation2] sm:$0xff] }
  0x27   :  { %391 = vmatpush.bf16.msra.mxu1 %v1064_v38  ;;  %v1124_v1 = vor.u32 %v1418_v61, %v1121_v62  ;;  %v1414_v2 = vld [vmem:[#allocation7 + $0xcc] sm:$0xf]  ;;  %v1105_v3 = vld [vmem:[#allocation7 + $0xd8] sm:$0xf0]  ;;  %v102_v4 = vpack.c.bf16 %v101_v0, %v101_v0  ;;  %v1015_v18 = vld [vmem:[#allocation7 + $0x20] sm:$0xf] }
  0x28   :  { %175 = vmatpush.bf16.msra.mxu0 %v1384_v37  ;;  %404 = vmatpush.bf16.msra.mxu2 %v1068_v39  ;;  %v1108_v5 = vor.u32 %v1414_v2, %v1105_v3  ;;  %v1410_v6 = vld [vmem:[#allocation7 + $0xac] sm:$0xf]  ;;  %v1089_v7 = vld [vmem:[#allocation7 + $0xb8] sm:$0xf0]  ;;  %v1395_v19 = vld [vmem:[#allocation7 + $0x2c] sm:$0xf0] }
  0x29   :  { %417 = vmatpush.bf16.msra.mxu3 %v1072_v40  ;;  %v1092_v8 = vor.u32 %v1410_v6, %v1089_v7  ;;  %v1406_v9 = vld [vmem:[#allocation7 + $0x8c] sm:$0xf]  ;;  %v1073_v10 = vld [vmem:[#allocation7 + $0x98] sm:$0xf0]  ;;  %v1393_v20 = vld [vmem:[#allocation7 + $0x24] sm:$0xf]  ;;  %v1016_v21 = vor.u32 %v1395_v19, %v1015_v18 }
  0x2a   :  { %v1076_v11 = vor.u32 %v1406_v9, %v1073_v10  ;;  %v1402_v12 = vld [vmem:[#allocation7 + $0x6c] sm:$0xf]  ;;  %v1057_v13 = vld [vmem:[#allocation7 + $0x78] sm:$0xf0]  ;;  %v1017_v22 = vld [vmem:[#allocation7 + $0x30] sm:$0xf0] }
  0x2b   :  { %392 = vmatpush.bf16.msra.mxu1 %v1048_v48  ;;  %v1060_v14 = vor.u32 %v1402_v12, %v1057_v13  ;;  %v1398_v15 = vld [vmem:[#allocation7 + $0x4c] sm:$0xf]  ;;  %v1041_v16 = vld [vmem:[#allocation7 + $0x58] sm:$0xf0]  ;;  %v1023_v23 = vld [vmem:[#allocation7 + $0x28] sm:$0xf]  ;;  %v1020_v25 = vor.u32 %v1393_v20, %v1017_v22 }
  0x2c   :  { %176 = vmatpush.bf16.msra.mxu0 %v1383_v47  ;;  %405 = vmatpush.bf16.msra.mxu2 %v1052_v50  ;;  %v1044_v17 = vor.u32 %v1398_v15, %v1041_v16  ;;  %v1396_v24 = vld [vmem:[#allocation7 + $0x34] sm:$0xf0]  ;;  %v1394_v27 = vld [vmem:[#allocation7 + $0x2c] sm:$0xf]  ;;  %v1025_v28 = vld [vmem:[#allocation7 + $0x38] sm:$0xf0] }
  0x2d   :  { %418 = vmatpush.bf16.msra.mxu3 %v1056_v51  ;;  %v1024_v26 = vor.u32 %v1396_v24, %v1023_v23  ;;  %v1028_v29 = vor.u32 %v1394_v27, %v1025_v28  ;;  %v999_v30 = vld [vmem:[#allocation7] sm:$0xf]  ;;  %v1391_v31 = vld [vmem:[#allocation7 + $0xc] sm:$0xf0]  ;;  %v1389_v32 = vld [vmem:[#allocation7 + $0x4] sm:$0xf] }
  0x2e   :  { %v1000_v33 = vor.u32 %v1391_v31, %v999_v30  ;;  %v1001_v34 = vld [vmem:[#allocation7 + $0x10] sm:$0xf0]  ;;  %v1007_v35 = vld [vmem:[#allocation7 + $0x8] sm:$0xf]  ;;  %v1392_v36 = vld [vmem:[#allocation7 + $0x14] sm:$0xf0] }
  0x2f   :  { %393 = vmatpush.bf16.msra.mxu1 %v1032_v58  ;;  %v1004_v37 = vor.u32 %v1389_v32, %v1001_v34  ;;  %v1008_v38 = vor.u32 %v1392_v36, %v1007_v35  ;;  %v1390_v39 = vld [vmem:[#allocation7 + $0xc] sm:$0xf]  ;;  %v1009_v40 = vld [vmem:[#allocation7 + $0x18] sm:$0xf0]  ;;  %v1183_v42 = vld [vmem:[#allocation10 + $0x70] sm:$0xf] }
  0x30   :  { %177 = vmatpush.bf16.msra.mxu0 %v1382_v57  ;;  %406 = vmatpush.bf16.msra.mxu2 %v1036_v59  ;;  %v1012_v41 = vor.u32 %v1390_v39, %v1009_v40  ;;  %v1436_v43 = vld [vmem:[#allocation10 + $0x74] sm:$0xf0]  ;;  %v1375_v44 = vld [vmem:[#allocation10 + $0x1f0] sm:$0xf]  ;;  %v1175_v47 = vld [vmem:[#allocation10 + $0x60] sm:$0xf] }
  0x31   :  { %419 = vmatpush.bf16.msra.mxu3 %v1040_v60  ;;  %v1184_v45 = vor.u32 %v1436_v43, %v1183_v42  ;;  %v1484_v46 = vld [vmem:[#allocation10 + $0x1f4] sm:$0xf0]  ;;  %v1434_v48 = vld [vmem:[#allocation10 + $0x64] sm:$0xf0]  ;;  %v1367_v50 = vld [vmem:[#allocation10 + $0x1e0] sm:$0xf] }
  0x32   :  { %v1376_v49 = vor.u32 %v1484_v46, %v1375_v44  ;;  %v1482_v51 = vld [vmem:[#allocation10 + $0x1e4] sm:$0xf0]  ;;  %v1247_v52 = vld [vmem:[#allocation10 + $0xf0] sm:$0xf]  ;;  %v1176_v53 = vor.u32 %v1434_v48, %v1175_v47  ;;  %v1452_v54 = vld [vmem:[#allocation10 + $0xf4] sm:$0xf0] }
  0x33   :  { %394 = vmatpush.bf16.msra.mxu1 %v1016_v21  ;;  %v1311_v55 = vld [vmem:[#allocation10 + $0x170] sm:$0xf]  ;;  %v1468_v56 = vld [vmem:[#allocation10 + $0x174] sm:$0xf0]  ;;  %v1368_v57 = vor.u32 %v1482_v51, %v1367_v50  ;;  %v1248_v58 = vor.u32 %v1452_v54, %v1247_v52  ;;  %v1239_v0 = vld [vmem:[#allocation10 + $0xe0] sm:$0xf] }
  0x34   :  { %178 = vmatpush.bf16.msra.mxu0 %v1381_v63  ;;  %407 = vmatpush.bf16.msra.mxu2 %v1020_v25  ;;  %v1312_v59 = vor.u32 %v1468_v56, %v1311_v55  ;;  %v1167_v60 = vld [vmem:[#allocation10 + $0x50] sm:$0xf]  ;;  %v1432_v61 = vld [vmem:[#allocation10 + $0x54] sm:$0xf0]  ;;  %v1303_v3 = vld [vmem:[#allocation10 + $0x160] sm:$0xf] }
  0x35   :  { %420 = vmatpush.bf16.msra.mxu3 %v1024_v26  ;;  %v1359_v62 = vld [vmem:[#allocation10 + $0x1d0] sm:$0xf]  ;;  %v1480_v63 = vld [vmem:[#allocation10 + $0x1d4] sm:$0xf0]  ;;  %v1159_v7 = vld [vmem:[#allocation10 + $0x40] sm:$0xf] }
  0x36   :  { %v1360_v9 = vor.u32 %v1480_v63, %v1359_v62  ;;  %v1231_v10 = vld [vmem:[#allocation10 + $0xd0] sm:$0xf]  ;;  %v1351_v13 = vld [vmem:[#allocation10 + $0x1c0] sm:$0xf]  ;;  %v1464_v15 = vld [vmem:[#allocation10 + $0x154] sm:$0xf0] }
  0x37   :  { %179 = vmatmul.bf16.vlgmr.msra.gmra.mxu0 %v102_v4  ;;  %395 = vmatpush.bf16.msra.mxu1 %v1000_v33  ;;  %v1466_v4 = vld [vmem:[#allocation10 + $0x164] sm:$0xf0]  ;;  %v1295_v12 = vld [vmem:[#allocation10 + $0x150] sm:$0xf]  ;;  %v1223_v18 = vld [vmem:[#allocation10 + $0xc0] sm:$0xf] }
  0x38   :  { %427 = vmatpush.bf16.msrb.mxu0 %v1124_v1  ;;  %408 = vmatpush.bf16.msra.mxu2 %v1004_v37  ;;  %v1450_v1 = vld [vmem:[#allocation10 + $0xe4] sm:$0xf0]  ;;  %v1304_v6 = vor.u32 %v1466_v4, %v1303_v3  ;;  %v1287_v21 = vld [vmem:[#allocation10 + $0x140] sm:$0xf]  ;;  %v1151_v24 = vld [vmem:[#allocation10 + $0x30] sm:$0xf] }
  0x39   :  { %421 = vmatpush.bf16.msra.mxu3 %v1008_v38  ;;  %v1240_v2 = vor.u32 %v1450_v1, %v1239_v0  ;;  %v1446_v20 = vld [vmem:[#allocation10 + $0xc4] sm:$0xf0]  ;;  %v1428_v25 = vld [vmem:[#allocation10 + $0x34] sm:$0xf0]  ;;  %v1343_v26 = vld [vmem:[#allocation10 + $0x1b0] sm:$0xf] }
  0x3a   :  { %v1462_v22 = vld [vmem:[#allocation10 + $0x144] sm:$0xf0]  ;;  %v1476_v27 = vld [vmem:[#allocation10 + $0x1b4] sm:$0xf0]  ;;  %v1224_v28 = vor.u32 %v1446_v20, %v1223_v18  ;;  %v1215_v30 = vld [vmem:[#allocation10 + $0xb0] sm:$0xf]  ;;  %v1152_v31 = vor.u32 %v1428_v25, %v1151_v24 }
  0x3b   :  { %838 = vmatpush.bf16.msrb.mxu1 %v1184_v45  ;;  %v1444_v32 = vld [vmem:[#allocation10 + $0xb4] sm:$0xf0]  ;;  %v1279_v33 = vld [vmem:[#allocation10 + $0x130] sm:$0xf]  ;;  %v1344_v35 = vor.u32 %v1476_v27, %v1343_v26  ;;  %v1143_v36 = vld [vmem:[#allocation10 + $0x20] sm:$0xf] }
  0x3c   :  { %428 = vmatpush.bf16.msrb.mxu0 %v1108_v5  ;;  %851 = vmatpush.bf16.msrb.mxu2 %v1248_v58  ;;  %v1168_v5 = vor.u32 %v1432_v61, %v1167_v60  ;;  %v1460_v34 = vld [vmem:[#allocation10 + $0x134] sm:$0xf0]  ;;  %v1426_v37 = vld [vmem:[#allocation10 + $0x24] sm:$0xf0]  ;;  %v1335_v38 = vld [vmem:[#allocation10 + $0x1a0] sm:$0xf]  ;;  %v1216_v40 = vor.u32 %v1444_v32, %v1215_v30 }
  0x3d   :  { %864 = vmatpush.bf16.msrb.mxu3 %v1312_v59  ;;  %v1474_v39 = vld [vmem:[#allocation10 + $0x1a4] sm:$0xf0]  ;;  %v1207_v42 = vld [vmem:[#allocation10 + $0xa0] sm:$0xf]  ;;  %v1144_v43 = vor.u32 %v1426_v37, %v1143_v36  ;;  %v1135_v48 = vld [vmem:[#allocation10 + $0x10] sm:$0xf] }
  0x3e   :  { %v1442_v44 = vld [vmem:[#allocation10 + $0xa4] sm:$0xf0]  ;;  %v1271_v45 = vld [vmem:[#allocation10 + $0x120] sm:$0xf]  ;;  %v1336_v47 = vor.u32 %v1474_v39, %v1335_v38  ;;  %v1497_v50 = vld [vmem:[%s1728_s2] ss:$0 sm:$0xff] }
  0x3f   :  { %839 = vmatpush.bf16.msrb.mxu1 %v1176_v53  ;;  %v1458_v46 = vld [vmem:[#allocation10 + $0x124] sm:$0xf0]  ;;  %v1327_v51 = vld [vmem:[#allocation10 + $0x190] sm:$0xf]  ;;  %v1472_v52 = vld [vmem:[#allocation10 + $0x194] sm:$0xf0]  ;;  %v1208_v53 = vor.u32 %v1442_v44, %v1207_v42 }
  0x40   :  { %429 = vmatpush.bf16.msrb.mxu0 %v1092_v8  ;;  %v1430_v8 = vld [vmem:[#allocation10 + $0x44] sm:$0xf0]  ;;  %852 = vmatpush.bf16.msrb.mxu2 %v1240_v2  ;;  %v1272_v54 = vor.u32 %v1458_v46, %v1271_v45  ;;  %v1199_v55 = vld [vmem:[#allocation10 + $0x90] sm:$0xf]  ;;  %v1456_v59 = vld [vmem:[#allocation10 + $0x114] sm:$0xf0]  ;;  %v1328_v61 = vor.u32 %v1472_v52, %v1327_v51 }
  0x41   :  { %865 = vmatpush.bf16.msrb.mxu3 %v1304_v6  ;;  %v1160_v19 = vor.u32 %v1430_v8, %v1159_v7  ;;  %v1263_v58 = vld [vmem:[#allocation10 + $0x110] sm:$0xf]  ;;  %v1127_v62 = vld [vmem:[#allocation10] sm:$0xf]  ;;  %v1422_v63 = vld [vmem:[#allocation10 + $0x4] sm:$0xf0] }
  0x42   :  { %v1319_v1 = vld [vmem:[#allocation10 + $0x180] sm:$0xf]  ;;  %v1470_v2 = vld [vmem:[#allocation10 + $0x184] sm:$0xf0]  ;;  %v1435_v3 = vld [vmem:[#allocation10 + $0x74] sm:$0xf]  ;;  %v1264_v8 = vor.u32 %v1456_v59, %v1263_v58 }
  0x43   :  { %840 = vmatpush.bf16.msrb.mxu1 %v1168_v5  ;;  %v1185_v4 = vld [vmem:[#allocation10 + $0x78] sm:$0xf0]  ;;  %v1483_v5 = vld [vmem:[#allocation10 + $0x1f4] sm:$0xf]  ;;  %v1177_v24 = vld [vmem:[#allocation10 + $0x68] sm:$0xf0] }
  0x44   :  { %430 = vmatpush.bf16.msrb.mxu0 %v1076_v11  ;;  %v1448_v11 = vld [vmem:[#allocation10 + $0xd4] sm:$0xf0]  ;;  %v1377_v6 = vld [vmem:[#allocation10 + $0x1f8] sm:$0xf0]  ;;  %v1481_v25 = vld [vmem:[#allocation10 + $0x1e4] sm:$0xf] }
  0x45   :  { %v1232_v16 = vor.u32 %v1448_v11, %v1231_v10  ;;  %v1191_v10 = vld [vmem:[#allocation10 + $0x80] sm:$0xf]  ;;  %v1438_v11 = vld [vmem:[#allocation10 + $0x84] sm:$0xf0]  ;;  %v1249_v18 = vld [vmem:[#allocation10 + $0xf8] sm:$0xf0] }
  0x46   :  { %v1313_v20 = vld [vmem:[#allocation10 + $0x178] sm:$0xf0]  ;;  %v1369_v26 = vld [vmem:[#allocation10 + $0x1e8] sm:$0xf0]  ;;  %v1192_v27 = vor.u32 %v1438_v11, %v1191_v10  ;;  %v1479_v36 = vld [vmem:[#allocation10 + $0x1d4] sm:$0xf] }
  0x47   :  { %853 = vmatpush.bf16.msrb.mxu2 %v1232_v16  ;;  %841 = vmatpush.bf16.msrb.mxu1 %v1160_v19  ;;  %v1128_v16 = vor.u32 %v1422_v63, %v1127_v62  ;;  %v1467_v19 = vld [vmem:[#allocation10 + $0x174] sm:$0xf]  ;;  %v1361_v38 = vld [vmem:[#allocation10 + $0x1d8] sm:$0xf0]  ;;  %v1305_v44 = vld [vmem:[#allocation10 + $0x168] sm:$0xf0] }
  0x48   :  { %431 = vmatpush.bf16.msrb.mxu0 %v1060_v14  ;;  %v1478_v14 = vld [vmem:[#allocation10 + $0x1c4] sm:$0xf0]  ;;  %v1364_v39 = vor.u32 %v1479_v36, %v1361_v38  ;;  %v1429_v46 = vld [vmem:[#allocation10 + $0x44] sm:$0xf]  ;;  %v1447_v52 = vld [vmem:[#allocation10 + $0xd4] sm:$0xf] }
  0x49   :  { %v1352_v23 = vor.u32 %v1478_v14, %v1351_v13  ;;  %v1454_v13 = vld [vmem:[#allocation10 + $0x104] sm:$0xf0]  ;;  %v1451_v14 = vld [vmem:[#allocation10 + $0xf4] sm:$0xf]  ;;  %v1153_v59 = vld [vmem:[#allocation10 + $0x38] sm:$0xf0] }
  0x4a   :  { %v1252_v30 = vor.u32 %v1451_v14, %v1249_v18  ;;  %v1427_v58 = vld [vmem:[#allocation10 + $0x34] sm:$0xf]  ;;  %v1345_v62 = vld [vmem:[#allocation10 + $0x1b8] sm:$0xf0]  ;;  %v1337_v10 = vld [vmem:[#allocation10 + $0x1a8] sm:$0xf0] }
  0x4b   :  { %854 = vmatpush.bf16.msrb.mxu2 %v1224_v28  ;;  %842 = vmatpush.bf16.msrb.mxu1 %v1152_v31  ;;  %v1316_v31 = vor.u32 %v1467_v19, %v1313_v20  ;;  %v1459_v14 = vld [vmem:[#allocation10 + $0x134] sm:$0xf]  ;;  %v1137_v19 = vld [vmem:[#allocation10 + $0x18] sm:$0xf0] }
  0x4c   :  { %432 = vmatpush.bf16.msrb.mxu0 %v1044_v17  ;;  %v1296_v17 = vor.u32 %v1464_v15, %v1295_v12  ;;  %v1255_v12 = vld [vmem:[#allocation10 + $0x100] sm:$0xf]  ;;  %v1423_v18 = vld [vmem:[#allocation10 + $0x14] sm:$0xf] }
  0x4d   :  { %v1256_v28 = vor.u32 %v1454_v13, %v1255_v12  ;;  %v1443_v12 = vld [vmem:[#allocation10 + $0xb4] sm:$0xf]  ;;  %v1217_v13 = vld [vmem:[#allocation10 + $0xb8] sm:$0xf0] }
  0x4e   :  { %866 = vmatpush.bf16.msrb.mxu3 %v1296_v17  ;;  %v1320_v17 = vor.u32 %v1470_v2, %v1319_v1  ;;  %v1225_v1 = vld [vmem:[#allocation10 + $0xc8] sm:$0xf0]  ;;  %v1461_v2 = vld [vmem:[#allocation10 + $0x144] sm:$0xf]  ;;  %v1471_v20 = vld [vmem:[#allocation10 + $0x194] sm:$0xf] }
  0x4f   :  { %855 = vmatpush.bf16.msrb.mxu2 %v1216_v40  ;;  %843 = vmatpush.bf16.msrb.mxu1 %v1144_v43  ;;  %v1449_v40 = vld [vmem:[#allocation10 + $0xe4] sm:$0xf]  ;;  %v1439_v36 = vld [vmem:[#allocation10 + $0x94] sm:$0xf] }
  0x50   :  { %433 = vmatpush.bf16.msrb.mxu0 %v1028_v29  ;;  %v1288_v29 = vor.u32 %v1462_v22, %v1287_v21  ;;  %v1188_v21 = vor.u32 %v1435_v3, %v1185_v4  ;;  %v1380_v22 = vor.u32 %v1483_v5, %v1377_v6  ;;  %v1465_v43 = vld [vmem:[#allocation10 + $0x164] sm:$0xf]  ;;  %v1289_v4 = vld [vmem:[#allocation10 + $0x148] sm:$0xf0]  ;;  %v1455_v38 = vld [vmem:[#allocation10 + $0x114] sm:$0xf] }
  0x51   :  { %v1308_v45 = vor.u32 %v1465_v43, %v1305_v44  ;;  %v1292_v5 = vor.u32 %v1461_v2, %v1289_v4  ;;  %v1425_v6 = vld [vmem:[#allocation10 + $0x24] sm:$0xf]  ;;  %v1193_v43 = vld [vmem:[#allocation10 + $0x88] sm:$0xf0] }
  0x52   :  { %867 = vmatpush.bf16.msrb.mxu3 %v1288_v29  ;;  %v1453_v44 = vld [vmem:[#allocation10 + $0x104] sm:$0xf] }
  0x53   :  { %856 = vmatpush.bf16.msrb.mxu2 %v1208_v53  ;;  %v1233_v53 = vld [vmem:[#allocation10 + $0xd8] sm:$0xf0] }
  0x54   :  { %434 = vmatpush.bf16.msrb.mxu0 %v1012_v41  ;;  %v1280_v41 = vor.u32 %v1460_v34, %v1279_v33  ;;  %v1372_v33 = vor.u32 %v1481_v25, %v1369_v26  ;;  %v1431_v34 = vld [vmem:[#allocation10 + $0x54] sm:$0xf] }
  0x56   :  { %868 = vmatpush.bf16.msrb.mxu3 %v1280_v41  ;;  %v1241_v41 = vld [vmem:[#allocation10 + $0xe8] sm:$0xf0] }
  0x57   :  { %v1244_v42 = vor.u32 %v1449_v40, %v1241_v41  ;;  %v1265_v40 = vld [vmem:[#allocation10 + $0x118] sm:$0xf0] }
  0x58   :  { %877 = vmatpush.bf16.msra.mxu0 %v1376_v49  ;;  %v1424_v49 = vld [vmem:[#allocation10 + $0x14] sm:$0xf0]  ;;  %v1268_v41 = vor.u32 %v1455_v38, %v1265_v40 }
  0x59   :  { %v1136_v56 = vor.u32 %v1424_v49, %v1135_v48  ;;  %v1477_v48 = vld [vmem:[#allocation10 + $0x1c4] sm:$0xf] }
  0x5a   :  { %869 = vmatpush.bf16.msrb.mxu3 %v1272_v54  ;;  %v1463_v54 = vld [vmem:[#allocation10 + $0x154] sm:$0xf] }
  0x5b   :  { %844 = vmatpush.bf16.msrb.mxu1 %v1136_v56  ;;  %v1297_v56 = vld [vmem:[#allocation10 + $0x158] sm:$0xf0] }
  0x5c   :  { %878 = vmatpush.bf16.msra.mxu0 %v1368_v57  ;;  %v1440_v57 = vld [vmem:[#allocation10 + $0x94] sm:$0xf0] }
  0x5d   :  { %v1200_v7 = vor.u32 %v1440_v57, %v1199_v55  ;;  %v1236_v55 = vor.u32 %v1447_v52, %v1233_v53  ;;  %v1300_v57 = vor.u32 %v1463_v54, %v1297_v56 }
  0x5e   :  { %870 = vmatpush.bf16.msrb.mxu3 %v1264_v8  ;;  %v1473_v8 = vld [vmem:[#allocation10 + $0x1a4] sm:$0xf] }
  0x5f   :  { %857 = vmatpush.bf16.msrb.mxu2 %v1200_v7  ;;  %845 = vmatpush.bf16.msrb.mxu1 %v1128_v16  ;;  %v1145_v7 = vld [vmem:[#allocation10 + $0x28] sm:$0xf0]  ;;  %v1340_v11 = vor.u32 %v1473_v8, %v1337_v10  ;;  %v1281_v16 = vld [vmem:[#allocation10 + $0x138] sm:$0xf0] }
  0x60   :  { %879 = vmatpush.bf16.msra.mxu0 %v1360_v9 }
  0x62   :  { %871 = vmatpush.bf16.msrb.mxu3 %v1256_v28  ;;  %v1273_v28 = vld [vmem:[#allocation10 + $0x128] sm:$0xf0] }
  0x63   :  { %858 = vmatpush.bf16.msrb.mxu2 %v1192_v27  ;;  %v1457_v27 = vld [vmem:[#allocation10 + $0x124] sm:$0xf] }
  0x64   :  { %880 = vmatpush.bf16.msra.mxu0 %v1352_v23  ;;  %v1433_v23 = vld [vmem:[#allocation10 + $0x64] sm:$0xf] }
  0x65   :  { %v1180_v32 = vor.u32 %v1433_v23, %v1177_v24  ;;  %v1441_v23 = vld [vmem:[#allocation10 + $0xa4] sm:$0xf]  ;;  %v1209_v24 = vld [vmem:[#allocation10 + $0xa8] sm:$0xf0] }
  0x66   :  { %v1212_v26 = vor.u32 %v1441_v23, %v1209_v24 }
  0x68   :  { %881 = vmatpush.bf16.msra.mxu0 %v1344_v35  ;;  %v1169_v35 = vld [vmem:[#allocation10 + $0x58] sm:$0xf0] }
  0x69   :  { %v1172_v37 = vor.u32 %v1431_v34, %v1169_v35 }
  0x6c   :  { %882 = vmatpush.bf16.msra.mxu0 %v1336_v47  ;;  %v1161_v47 = vld [vmem:[#allocation10 + $0x48] sm:$0xf0] }
  0x6d   :  { %v1164_v49 = vor.u32 %v1429_v46, %v1161_v47  ;;  %v1257_v46 = vld [vmem:[#allocation10 + $0x108] sm:$0xf0]  ;;  %v218_v47 = vld [vmem:[#allocation8] sm:$0xf] }
  0x6e   :  { %v221_v56 = vperm.slane %v218_v47, 1 }
  0x70   :  { %883 = vmatpush.bf16.msra.mxu0 %v1328_v61  ;;  %v1475_v61 = vld [vmem:[#allocation10 + $0x1b4] sm:$0xf] }
  0x71   :  { %v1348_v63 = vor.u32 %v1475_v61, %v1345_v62 }
  0x74   :  { %884 = vmatpush.bf16.msra.mxu0 %v1320_v17  ;;  %v1284_v17 = vor.u32 %v1459_v14, %v1281_v16 }
  0xb4   :  { %v180_v60 = vpop.f32.mrf.mxu0 }
  0xb5   :  { %v181_v0 = vadd.f32 %v1497_v50, %v180_v60  ;;  %v1353_v50 = vld [vmem:[#allocation10 + $0x1c8] sm:$0xf0]  ;;  %v1156_v60 = vor.u32 %v1427_v58, %v1153_v59  ;;  %v222_v58 = vperm.slane %v218_v47, 2 }
  0xb6   :  { %v1356_v51 = vor.u32 %v1477_v48, %v1353_v50  ;;  %v1260_v48 = vor.u32 %v1453_v44, %v1257_v46  ;;  %v223_v50 = vperm.slane %v218_v47, 3 }
  0xb7   :  { %v184_v9 = vmax.f32 %v181_v0, 0.0  ;;  %v1445_v0 = vld [vmem:[#allocation10 + $0xc4] sm:$0xf] }
  0xb8   :  { %v1228_v3 = vor.u32 %v1445_v0, %v1225_v1 }
  0xb9   :  { %v185_v15 = vpack.c.bf16 %v184_v9, %v184_v9  ;;  %v1148_v9 = vor.u32 %v1425_v6, %v1145_v7 }
  0xbb   :  { %396 = vmatmul.bf16.vlgmr.msra.gmra.mxu1 %v185_v15  ;;  %409 = vmatmul.bf16.vlgmr.msra.gmra.mxu2 %v185_v15 }
  0xbc   :  { %422 = vmatmul.bf16.vlgmr.msra.gmra.mxu3 %v185_v15  ;;  %435 = vmatmul.bf16.vlgmr.msrb.gmra.mxu0 %v185_v15  ;;  %v182_v29 = vpop.f32.mrf.mxu0  ;;  %v1220_v15 = vor.u32 %v1443_v12, %v1217_v13 }
  0xbd   :  { %890 = vmatpush.bf16.msra.mxu1 %v1188_v21  ;;  %929 = vmatpush.bf16.msrb.mxu0 %v1380_v22  ;;  %v1140_v21 = vor.u32 %v1423_v18, %v1137_v19  ;;  %v1329_v22 = vld [vmem:[#allocation10 + $0x198] sm:$0xf0]  ;;  %v1421_v29 = vld [vmem:[#allocation10 + $0x4] sm:$0xf] }
  0xbe   :  { %903 = vmatpush.bf16.msra.mxu2 %v1252_v30  ;;  %916 = vmatpush.bf16.msra.mxu3 %v1316_v31  ;;  %v1332_v25 = vor.u32 %v1471_v20, %v1329_v22  ;;  %v1276_v30 = vor.u32 %v1457_v27, %v1273_v28  ;;  %v1129_v31 = vld [vmem:[#allocation10 + $0x8] sm:$0xf0] }
  0xbf   :  { %v1132_v34 = vor.u32 %v1421_v29, %v1129_v31 }
  0xc1   :  { %891 = vmatpush.bf16.msra.mxu1 %v1180_v32  ;;  %930 = vmatpush.bf16.msrb.mxu0 %v1372_v33  ;;  %v1469_v32 = vld [vmem:[#allocation10 + $0x184] sm:$0xf]  ;;  %v1321_v33 = vld [vmem:[#allocation10 + $0x188] sm:$0xf0] }
  0xc2   :  { %904 = vmatpush.bf16.msra.mxu2 %v1244_v42  ;;  %917 = vmatpush.bf16.msra.mxu3 %v1308_v45  ;;  %v1324_v35 = vor.u32 %v1469_v32, %v1321_v33  ;;  %v1437_v42 = vld [vmem:[#allocation10 + $0x84] sm:$0xf] }
  0xc3   :  { %v1196_v45 = vor.u32 %v1437_v42, %v1193_v43 }
  0xc5   :  { %892 = vmatpush.bf16.msra.mxu1 %v1172_v37  ;;  %931 = vmatpush.bf16.msrb.mxu0 %v1364_v39  ;;  %v1201_v37 = vld [vmem:[#allocation10 + $0x98] sm:$0xf0] }
  0xc6   :  { %905 = vmatpush.bf16.msra.mxu2 %v1236_v55  ;;  %918 = vmatpush.bf16.msra.mxu3 %v1300_v57  ;;  %v1204_v39 = vor.u32 %v1439_v36, %v1201_v37 }
  0xc9   :  { %893 = vmatpush.bf16.msra.mxu1 %v1164_v49  ;;  %932 = vmatpush.bf16.msrb.mxu0 %v1356_v51  ;;  %v220_v49 = vperm.slane %v218_v47, 0 }
  0xca   :  { %906 = vmatpush.bf16.msra.mxu2 %v1228_v3  ;;  %919 = vmatpush.bf16.msra.mxu3 %v1292_v5 }
  0xcd   :  { %894 = vmatpush.bf16.msra.mxu1 %v1156_v60  ;;  %933 = vmatpush.bf16.msrb.mxu0 %v1348_v63 }
  0xce   :  { %907 = vmatpush.bf16.msra.mxu2 %v1220_v15  ;;  %920 = vmatpush.bf16.msra.mxu3 %v1284_v17 }
  0xd1   :  { %895 = vmatpush.bf16.msra.mxu1 %v1148_v9  ;;  %934 = vmatpush.bf16.msrb.mxu0 %v1340_v11  ;;  %v512_v11 = vld [vmem:[%s1732_s6] sm:$0x3]  ;;  %s1661_s6 = smov [#allocation11]  }
  0xd2   :  { %908 = vmatpush.bf16.msra.mxu2 %v1212_v26  ;;  %921 = vmatpush.bf16.msra.mxu3 %v1276_v30  ;;  %v514_v12 = vperm.slane %v512_v11, 0  ;;  %v515_v26 = vperm.slane %v512_v11, 1  ;;  %s951_s30 = sshll.u32 %s1661_s6, 4  ;;  %s952_s30 = int_to_ptr.vmem [resolvable:$true] %s951_s30 }
  0xd5   :  { %896 = vmatpush.bf16.msra.mxu1 %v1140_v21  ;;  %935 = vmatpush.bf16.msrb.mxu0 %v1332_v25 }
  0xd6   :  { %909 = vmatpush.bf16.msra.mxu2 %v1204_v39  ;;  %922 = vmatpush.bf16.msra.mxu3 %v1268_v41 }
  0xd9   :  { %897 = vmatpush.bf16.msra.mxu1 %v1132_v34  ;;  %936 = vmatpush.bf16.msrb.mxu0 %v1324_v35 }
  0xda   :  { %910 = vmatpush.bf16.msra.mxu2 %v1196_v45  ;;  %923 = vmatpush.bf16.msra.mxu3 %v1260_v48 }
 0x138   :  { %v397_v51 = vpop.f32.mrf.mxu1 }
 0x139   :  { %v398_v52 = vadd.f32 %v397_v51, %v220_v49  ;;  %v436_v53 = vpop.f32.mrf.mxu0 }
 0x13a   :  { %v437_v54 = vadd.f32 %v436_v53, %v223_v50 }
 0x13b   :  { %v440_v55 = vmax.f32 %v398_v52, 0.0 }
 0x13c   :  { %v443_v57 = vmax.f32 %v437_v54, 0.0 }
 0x13d   :  { %v444_v59 = vpack.c.bf16 %v440_v55, %v440_v55 }
 0x13e   :  { %v447_v60 = vpack.c.bf16 %v443_v57, %v443_v57  ;;  %v410_v61 = vpop.f32.mrf.mxu2 }
 0x13f   :  { %v411_v62 = vadd.f32 %v410_v61, %v221_v56  ;;  %v423_v63 = vpop.f32.mrf.mxu3  ;;  %846 = vmatmul.bf16.vlgmr.msrb.gmra.mxu1 %v444_v59 }
 0x140   :  { %v424_v0 = vadd.f32 %v423_v63, %v222_v58  ;;  %885 = vmatmul.bf16.vlgmr.msra.gmra.mxu0 %v447_v60  ;;  %v399_v1 = vpop.f32.mrf.mxu1 }
 0x141   :  { %v441_v2 = vmax.f32 %v411_v62, 0.0  ;;  %v438_v3 = vpop.f32.mrf.mxu0 }
 0x142   :  { %v442_v4 = vmax.f32 %v424_v0, 0.0 }
 0x143   :  { %v445_v5 = vpack.c.bf16 %v441_v2, %v441_v2 }
 0x144   :  { %v446_v6 = vpack.c.bf16 %v442_v4, %v442_v4 }
 0x145   :  { %859 = vmatmul.bf16.vlgmr.msrb.gmra.mxu2 %v445_v5 }
 0x146   :  { %872 = vmatmul.bf16.vlgmr.msrb.gmra.mxu3 %v446_v6  ;;  %v412_v7 = vpop.f32.mrf.mxu2 }
 0x147   :  { %v425_v8 = vpop.f32.mrf.mxu3 }
 0x14f   :  { %898 = vmatmul.bf16.vlgmr.msra.gmra.mxu1 %v444_v59 }
 0x150   :  { %937 = vmatmul.bf16.vlgmr.msrb.gmra.mxu0 %v447_v60 }
 0x155   :  { %911 = vmatmul.bf16.vlgmr.msra.gmra.mxu2 %v445_v5 }
 0x156   :  { %924 = vmatmul.bf16.vlgmr.msra.gmra.mxu3 %v446_v6 }
 0x1bc   :  { %v847_v9 = vpop.f32.mrf.mxu1 }
 0x1bd   :  { %v886_v10 = vpop.f32.mrf.mxu0  ;;  %v848_v15 = vadd.f32 %v847_v9, %v514_v12 }
 0x1c4   :  { %v849_v13 = vpop.f32.mrf.mxu1 }
 0x1c5   :  { %v888_v14 = vpop.f32.mrf.mxu0 }
 0x1c8   :  { %v860_v16 = vpop.f32.mrf.mxu2 }
 0x1c9   :  { %v861_v17 = vadd.f32 %v860_v16, %v848_v15  ;;  %v873_v18 = vpop.f32.mrf.mxu3 }
 0x1cb   :  { %v874_v19 = vadd.f32 %v873_v18, %v861_v17 }
 0x1cc   :  { %v899_v20 = vpop.f32.mrf.mxu1 }
 0x1cd   :  { %v887_v21 = vadd.f32 %v886_v10, %v874_v19  ;;  %v938_v22 = vpop.f32.mrf.mxu0  ;;  %v900_v29 = vadd.f32 %v899_v20, %v515_v26 }
 0x1cf   :  { %v942_v23 = vmax.f32 %v887_v21, 0.0 }
 0x1d0   :  { %v862_v24 = vpop.f32.mrf.mxu2 }
 0x1d1   :  { %944 = vst [vmem:[#allocation11] sm:$0xff] %v942_v23  ;;  %v875_v25 = vpop.f32.mrf.mxu3 }
 0x1d4   :  { %v901_v27 = vpop.f32.mrf.mxu1 }
 0x1d5   :  { %v940_v28 = vpop.f32.mrf.mxu0 }
 0x1d8   :  { %v912_v30 = vpop.f32.mrf.mxu2 }
 0x1d9   :  { %v913_v31 = vadd.f32 %v912_v30, %v900_v29  ;;  %v925_v32 = vpop.f32.mrf.mxu3 }
 0x1db   :  { %v926_v33 = vadd.f32 %v925_v32, %v913_v31 }
 0x1dd   :  { %v939_v34 = vadd.f32 %v938_v22, %v926_v33 }
 0x1df   :  { %v943_v35 = vmax.f32 %v939_v34, 0.0 }
 0x1e0   :  { %v914_v36 = vpop.f32.mrf.mxu2 }
 0x1e1   :  { %945 = vst [vmem:[#allocation11 + $0x8] sm:$0xff] %v943_v35  ;;  %v927_v37 = vpop.f32.mrf.mxu3 }
 0x1e2   :  { %956 = dma.vmem_to_hbm [thread:$0]  %s952_s30, 256, %s954_s10, [#allocation4]  }
 0x1e3   :  { %1648 = dma.done.wait [#allocation4], 256  }
 0x1e4   :  { %1649 = vsyncadd [#allocation4], 4294967040 }
 0x1e5   :  { %961 = vsyncpa [#allocation3], 1 }
 0x1e6   :  { %962 = vsyncpa [#allocation6], 1 }
 0x1e7   :  { %963 = vsyncpa [#allocation9], 1 }
 0x1e8   :  { %964 = vsyncpa [#allocation4], 1 }

</bundles_post_ra>
